<compile_context>
chip_gen: v7x
topology: tpu7x:2x2x1
jax: 0.10.0
libtpu: 0.0.40
codegen_flags: <defaults>
</compile_context>

<pallas_src>
import functools

import jax
import jax.numpy as jnp
from jax import lax
from jax.experimental import pallas as pl
from jax.experimental.pallas import tpu as pltpu


def _round_up(x, m):
    return ((x + m - 1) // m) * m


def _vmem_capacity_bytes():
    """Physical per-core VMEM; falls back to the smallest generation (v7x, 64 MiB)."""
    try:
        info = pltpu.get_tpu_info()
        cap = getattr(info, "vmem_capacity_bytes", None)
        if cap:
            return int(cap)
    except Exception:
        pass
    return 64 * 1024 * 1024


def _pick_block_rows(b, d, vmem_cap):
    """Tile rows from an explicit VMEM budget; multiple of 128; >=2 tiles for b>128."""
    # Per-row VMEM: 4 gathered f32 rows (hr/hi/tr/ti) + roughly the same again
    # for in-flight temporaries (rr, ri, s, one-hot) -> ~40*d bytes per row.
    budget = vmem_cap // 4
    per_row = 40 * d + 1024
    tb = (budget // per_row) // 128 * 128
    tb = max(128, min(tb, 2048))
    if b > 128:
        # Guarantee at least two grid steps so "parallel" can split the batch
        # across both TensorCores on v7x (no effect on single-TC v5e/v6e).
        tb = min(tb, _round_up(pl.cdiv(b, 2), 128))
    tb = min(tb, _round_up(b, 128))
    return max(tb, 128)


# ---------------------------------------------------------------------------
# Kernel: fused gather + ComplEx score + sigmoid for one TB-row batch tile
# ---------------------------------------------------------------------------
def _complex_kernel(tb, d, r_pad,
                    head_sm, tail_sm,                 # scalar-prefetch (SMEM) [B_pad] int32
                    rel_idx_ref,                      # (1, tb, 1) int32 (VMEM)
                    rel_re_ref, rel_im_ref,           # (r_pad, d) f32, resident in VMEM
                    ent_re_hbm, ent_im_hbm,           # (E, d) f32, raw HBM refs
                    out_ref,                          # (1, 1, tb) f32
                    hr_buf, hi_buf, tr_buf, ti_buf,   # (tb, d) f32 VMEM scratch
                    sem):                             # DMA semaphore (1,)
    base = pl.program_id(0) * tb

    # ---- Fused embedding gather: one row-DMA per (row, table), HBM -> VMEM.
    @pl.loop(0, tb)
    def _issue(r):
        h = head_sm[base + r]
        t = tail_sm[base + r]
        pltpu.make_async_copy(ent_re_hbm.at[h], hr_buf.at[r], sem.at[0]).start()
        pltpu.make_async_copy(ent_im_hbm.at[h], hi_buf.at[r], sem.at[0]).start()
        pltpu.make_async_copy(ent_re_hbm.at[t], tr_buf.at[r], sem.at[0]).start()
        pltpu.make_async_copy(ent_im_hbm.at[t], ti_buf.at[r], sem.at[0]).start()

    # Wait with per-row descriptors matching the issued copies (byte totals match).
    @pl.loop(0, tb)
    def _wait(r):
        pltpu.make_async_copy(ent_re_hbm.at[0], hr_buf.at[r], sem.at[0]).wait()
        pltpu.make_async_copy(ent_im_hbm.at[0], hi_buf.at[r], sem.at[0]).wait()
        pltpu.make_async_copy(ent_re_hbm.at[0], tr_buf.at[r], sem.at[0]).wait()
        pltpu.make_async_copy(ent_im_hbm.at[0], ti_buf.at[r], sem.at[0]).wait()

    hr = hr_buf[...]
    hi = hi_buf[...]
    tr = tr_buf[...]
    ti = ti_buf[...]

    # ---- Relation rows reconstructed from the VMEM-resident tables on the
    #      otherwise-idle MXU: one_hot(relation)[tb, r_pad] @ rel_table[r_pad, d].
    rel_col = rel_idx_ref[0]                                      # (tb, 1) int32
    r_iota = lax.broadcasted_iota(jnp.int32, (tb, r_pad), 1)      # (tb, r_pad)
    onehot = (rel_col == r_iota).astype(jnp.float32)              # (tb, r_pad)
    rr = jnp.dot(onehot, rel_re_ref[...], preferred_element_type=jnp.float32)
    ri = jnp.dot(onehot, rel_im_ref[...], preferred_element_type=jnp.float32)

    # ---- ComplEx score, refactored to 6 VPU multiplies per element.
    s = hr * (rr * tr + ri * ti) + hi * (rr * ti - ri * tr)       # (tb, d)

    # Row reduction as ones(1, d) . s^T -> result is already a lane-dense
    # (1, tb) row (no masked width-1 stores, no sublane->lane relayout).
    # NOTE: re-check the critical unit if HBM time keeps shrinking; today the
    # DMA path dominates so this MXU reduction is free.
    ones_row = jnp.ones((1, d), jnp.float32)
    score = lax.dot_general(ones_row, s, (((1,), (1,)), ((), ())),
                            preferred_element_type=jnp.float32)    # (1, tb)
    out_ref[...] = jax.nn.sigmoid(score).reshape(out_ref.shape)    # (1, 1, tb)


# ---------------------------------------------------------------------------
# Module-level forward
# ---------------------------------------------------------------------------
def init_complex_params(key, embedding_dim, relation_size, entity_size):
    k1, k2, k3, k4 = jax.random.split(key, 4)
    # nn.Embedding default init: N(0, 1)
    return (
        jax.random.normal(k1, (entity_size, embedding_dim), jnp.float32),    # entity_re
        jax.random.normal(k2, (entity_size, embedding_dim), jnp.float32),    # entity_im
        jax.random.normal(k3, (relation_size, embedding_dim), jnp.float32),  # relation_re
        jax.random.normal(k4, (relation_size, embedding_dim), jnp.float32),  # relation_im
    )


def complex_forward(params, head, tail, relation, *, block_rows=None):
    """sigmoid(ComplEx score) -> [B]; gathers fused into the Pallas kernel."""
    ent_re, ent_im, rel_re, rel_im = params
    _, d = ent_re.shape
    r = rel_re.shape[0]
    b = head.shape[0]

    vmem_cap = _vmem_capacity_bytes()
    tb = block_rows if block_rows is not None else _pick_block_rows(b, d, vmem_cap)
    assert tb % 128 == 0, "block_rows must be a multiple of 128 (lane-dense output)"
    g = pl.cdiv(b, tb)
    b_pad = g * tb

    head = head.astype(jnp.int32)
    tail = tail.astype(jnp.int32)
    relation = relation.astype(jnp.int32)
    if b_pad != b:
        # Pad the cheap int32 index vectors (4 B/row), not gathered [B, D]
        # arrays; index 0 is always in range, padded rows are sliced off below.
        pad = (0, b_pad - b)
        head = jnp.pad(head, pad)
        tail = jnp.pad(tail, pad)
        relation = jnp.pad(relation, pad)
    rel_idx = relation.reshape(g, tb, 1)

    # Small relation tables stay resident in VMEM; pad rows to a sublane multiple.
    r_pad = _round_up(max(r, 8), 8)
    if r_pad != r:
        rel_re = jnp.pad(rel_re, ((0, r_pad - r), (0, 0)))
        rel_im = jnp.pad(rel_im, ((0, r_pad - r), (0, 0)))

    kernel = functools.partial(_complex_kernel, tb, d, r_pad)

    cost = pl.CostEstimate(
        flops=int(b_pad * d * 9 + 2 * b_pad * r_pad * d),
        transcendentals=int(b_pad),
        bytes_accessed=int(4 * b_pad * d * 4      # gathered entity rows
                           + 2 * r_pad * d * 4    # resident relation tables
                           + 3 * b_pad * 4        # index vectors
                           + b_pad * 4),          # output
    )

    grid_spec = pltpu.PrefetchScalarGridSpec(
        num_scalar_prefetch=2,                    # head, tail -> SMEM
        grid=(g,),
        in_specs=[
            pl.BlockSpec((1, tb, 1), lambda i, hs, ts: (i, 0, 0)),   # relation idx
            pl.BlockSpec((r_pad, d), lambda i, hs, ts: (0, 0)),      # rel_re (resident)
            pl.BlockSpec((r_pad, d), lambda i, hs, ts: (0, 0)),      # rel_im (resident)
            pl.BlockSpec(memory_space=pl.ANY),                        # ent_re (HBM)
            pl.BlockSpec(memory_space=pl.ANY),                        # ent_im (HBM)
        ],
        out_specs=pl.BlockSpec((1, 1, tb), lambda i, hs, ts: (i, 0, 0)),
        scratch_shapes=[
            pltpu.VMEM((tb, d), jnp.float32),     # hr
            pltpu.VMEM((tb, d), jnp.float32),     # hi
            pltpu.VMEM((tb, d), jnp.float32),     # tr
            pltpu.VMEM((tb, d), jnp.float32),     # ti
            pltpu.SemaphoreType.DMA((1,)),
        ],
    )

    out = pl.pallas_call(
        kernel,
        out_shape=jax.ShapeDtypeStruct((g, 1, tb), jnp.float32),
        grid_spec=grid_spec,
        compiler_params=pltpu.CompilerParams(
            dimension_semantics=("parallel",),
            vmem_limit_bytes=int(vmem_cap * 3 // 4),
        ),
        cost_estimate=cost,
    )(head, tail, rel_idx, rel_re, rel_im, ent_re, ent_im)
    return out.reshape(-1)[:b]


# Complex.predict is identical to Complex.forward in the spec.
complex_predict = complex_forward


# ---------------------------------------------------------------------------
# Pure-JAX reference (mirrors the PyTorch forward term-by-term)
# ---------------------------------------------------------------------------
def complex_forward_reference(params, head, tail, relation):
    ent_re, ent_im, rel_re, rel_im = params
    hr, hi = ent_re[head], ent_im[head]
    tr, ti = ent_re[tail], ent_im[tail]
    rr, ri = rel_re[relation], rel_im[relation]
    s = (jnp.sum(rr * hr * tr, axis=1) + jnp.sum(rr * hi * ti, axis=1)
         + jnp.sum(ri * hr * ti, axis=1) - jnp.sum(ri * hi * tr, axis=1))
    return jax.nn.sigmoid(s)


if __name__ == "__main__":
    embedding_dim = 32
    entity_size = 64
    relation_size = 8

    key = jax.random.PRNGKey(0)
    k_params, k_idx = jax.random.split(key)
    params = init_complex_params(k_params, embedding_dim, relation_size, entity_size)

    # (batch, block_rows override): single-tile + heavy index padding,
    # auto-tiled multi-step grid, and a forced 3-step grid.
    for batch, block_rows in ((13, None), (300, None), (300, 128)):
        k1, k2, k3 = jax.random.split(jax.random.fold_in(k_idx, batch), 3)
        head = jax.random.randint(k1, (batch,), 0, entity_size, jnp.int32)
        tail = jax.random.randint(k2, (batch,), 0, entity_size, jnp.int32)
        relation = jax.random.randint(k3, (batch,), 0, relation_size, jnp.int32)

        ref = complex_forward_reference(params, head, tail, relation)
        out = jax.block_until_ready(
            complex_forward(params, head, tail, relation, block_rows=block_rows))

        assert out.shape == (batch,), (out.shape, batch)
        assert jnp.allclose(out, ref, atol=1e-4, rtol=1e-4), (batch, block_rows)

    print("KERNEL_OK")
</pallas_src>

<mosaic_0001>
module attributes {stable_mosaic.version = 11 : i64} {
  func.func @_complex_kernel(%arg0: i32, %arg1: memref<128xi32, #tpu.memory_space<smem>>, %arg2: memref<128xi32, #tpu.memory_space<smem>>, %arg3: memref<1x128x1xi32, #tpu.memory_space<vmem>>, %arg4: memref<8x32xf32, #tpu.memory_space<vmem>>, %arg5: memref<8x32xf32, #tpu.memory_space<vmem>>, %arg6: memref<64x32xf32, #tpu.memory_space<any>>, %arg7: memref<64x32xf32, #tpu.memory_space<any>>, %arg8: memref<1x1x128xf32, #tpu.memory_space<vmem>>, %arg9: memref<128x32xf32, #tpu.memory_space<vmem>>, %arg10: memref<128x32xf32, #tpu.memory_space<vmem>>, %arg11: memref<128x32xf32, #tpu.memory_space<vmem>>, %arg12: memref<128x32xf32, #tpu.memory_space<vmem>>, %arg13: memref<1x!tpu.dma_semaphore, #tpu.memory_space<semaphore_mem>>) attributes {dimension_semantics = [#tpu.dimension_semantics<parallel>], iteration_bounds = array<i64: 1>, scalar_prefetch = 2 : i64, scratch_operands = 5 : i64, tpu.core_type = #tpu.core_type<tc>, window_params = [{transform_indices = @transform_0, window_bounds = array<i64: 1, 128, 1>}, {pipeline_mode = #tpu.pipeline_mode<synchronous>, transform_indices = @transform_1, window_bounds = array<i64: 8, 32>}, {pipeline_mode = #tpu.pipeline_mode<synchronous>, transform_indices = @transform_2, window_bounds = array<i64: 8, 32>}, {}, {}, {transform_indices = @transform_5, window_bounds = array<i64: 1, 1, 128>}]} {
    %c128_i32 = arith.constant 128 : i32
    %0 = arith.muli %arg0, %c128_i32 : i32
    %c0_i32 = arith.constant 0 : i32
    %c128_i32_0 = arith.constant 128 : i32
    %1 = arith.addi %c0_i32, %c128_i32_0 : i32
    %c1_i32 = arith.constant 1 : i32
    scf.for %arg14 = %c0_i32 to %1 step %c1_i32  : i32 {
      %c1_i32_27 = arith.constant 1 : i32
      %36 = arith.muli %arg14, %c1_i32_27 : i32
      %c0_i32_28 = arith.constant 0 : i32
      %37 = arith.addi %c0_i32_28, %36 : i32
      %38 = arith.addi %0, %37 : i32
      %39 = arith.index_cast %38 : i32 to index
      %40 = memref.load %arg1[%39] : memref<128xi32, #tpu.memory_space<smem>>
      %41 = arith.addi %0, %37 : i32
      %42 = arith.index_cast %41 : i32 to index
      %43 = memref.load %arg2[%42] : memref<128xi32, #tpu.memory_space<smem>>
      %c0_i32_29 = arith.constant 0 : i32
      %c0_i32_30 = arith.constant 0 : i32
      %44 = tpu.memref_slice %arg6[%40, %c0_i32_30] : memref<64x32xf32, #tpu.memory_space<any>> -> memref<1x32xf32, #tpu.memory_space<any>>
      %45 = tpu.memref_squeeze %44 : memref<1x32xf32, #tpu.memory_space<any>> -> memref<32xf32, #tpu.memory_space<any>>
      %c0_i32_31 = arith.constant 0 : i32
      %46 = tpu.memref_slice %arg9[%37, %c0_i32_31] : memref<128x32xf32, #tpu.memory_space<vmem>> -> memref<1x32xf32, #tpu.memory_space<vmem>>
      %47 = tpu.memref_squeeze %46 : memref<1x32xf32, #tpu.memory_space<vmem>> -> memref<32xf32, #tpu.memory_space<vmem>>
      %48 = tpu.memref_slice %arg13[%c0_i32_29] : memref<1x!tpu.dma_semaphore, #tpu.memory_space<semaphore_mem>> -> memref<1x!tpu.dma_semaphore, #tpu.memory_space<semaphore_mem>>
      %49 = tpu.memref_squeeze %48 : memref<1x!tpu.dma_semaphore, #tpu.memory_space<semaphore_mem>> -> memref<!tpu.dma_semaphore, #tpu.memory_space<semaphore_mem>>
      tpu.enqueue_dma source(%45 : memref<32xf32, #tpu.memory_space<any>>) target(%47 : memref<32xf32, #tpu.memory_space<vmem>>) target_semaphore(%49 : memref<!tpu.dma_semaphore, #tpu.memory_space<semaphore_mem>>)
      %c0_i32_32 = arith.constant 0 : i32
      %c0_i32_33 = arith.constant 0 : i32
      %50 = tpu.memref_slice %arg7[%40, %c0_i32_33] : memref<64x32xf32, #tpu.memory_space<any>> -> memref<1x32xf32, #tpu.memory_space<any>>
      %51 = tpu.memref_squeeze %50 : memref<1x32xf32, #tpu.memory_space<any>> -> memref<32xf32, #tpu.memory_space<any>>
      %c0_i32_34 = arith.constant 0 : i32
      %52 = tpu.memref_slice %arg10[%37, %c0_i32_34] : memref<128x32xf32, #tpu.memory_space<vmem>> -> memref<1x32xf32, #tpu.memory_space<vmem>>
      %53 = tpu.memref_squeeze %52 : memref<1x32xf32, #tpu.memory_space<vmem>> -> memref<32xf32, #tpu.memory_space<vmem>>
      %54 = tpu.memref_slice %arg13[%c0_i32_32] : memref<1x!tpu.dma_semaphore, #tpu.memory_space<semaphore_mem>> -> memref<1x!tpu.dma_semaphore, #tpu.memory_space<semaphore_mem>>
      %55 = tpu.memref_squeeze %54 : memref<1x!tpu.dma_semaphore, #tpu.memory_space<semaphore_mem>> -> memref<!tpu.dma_semaphore, #tpu.memory_space<semaphore_mem>>
      tpu.enqueue_dma source(%51 : memref<32xf32, #tpu.memory_space<any>>) target(%53 : memref<32xf32, #tpu.memory_space<vmem>>) target_semaphore(%55 : memref<!tpu.dma_semaphore, #tpu.memory_space<semaphore_mem>>)
      %c0_i32_35 = arith.constant 0 : i32
      %c0_i32_36 = arith.constant 0 : i32
      %56 = tpu.memref_slice %arg6[%43, %c0_i32_36] : memref<64x32xf32, #tpu.memory_space<any>> -> memref<1x32xf32, #tpu.memory_space<any>>
      %57 = tpu.memref_squeeze %56 : memref<1x32xf32, #tpu.memory_space<any>> -> memref<32xf32, #tpu.memory_space<any>>
      %c0_i32_37 = arith.constant 0 : i32
      %58 = tpu.memref_slice %arg11[%37, %c0_i32_37] : memref<128x32xf32, #tpu.memory_space<vmem>> -> memref<1x32xf32, #tpu.memory_space<vmem>>
      %59 = tpu.memref_squeeze %58 : memref<1x32xf32, #tpu.memory_space<vmem>> -> memref<32xf32, #tpu.memory_space<vmem>>
      %60 = tpu.memref_slice %arg13[%c0_i32_35] : memref<1x!tpu.dma_semaphore, #tpu.memory_space<semaphore_mem>> -> memref<1x!tpu.dma_semaphore, #tpu.memory_space<semaphore_mem>>
      %61 = tpu.memref_squeeze %60 : memref<1x!tpu.dma_semaphore, #tpu.memory_space<semaphore_mem>> -> memref<!tpu.dma_semaphore, #tpu.memory_space<semaphore_mem>>
      tpu.enqueue_dma source(%57 : memref<32xf32, #tpu.memory_space<any>>) target(%59 : memref<32xf32, #tpu.memory_space<vmem>>) target_semaphore(%61 : memref<!tpu.dma_semaphore, #tpu.memory_space<semaphore_mem>>)
      %c0_i32_38 = arith.constant 0 : i32
      %c0_i32_39 = arith.constant 0 : i32
      %62 = tpu.memref_slice %arg7[%43, %c0_i32_39] : memref<64x32xf32, #tpu.memory_space<any>> -> memref<1x32xf32, #tpu.memory_space<any>>
      %63 = tpu.memref_squeeze %62 : memref<1x32xf32, #tpu.memory_space<any>> -> memref<32xf32, #tpu.memory_space<any>>
      %c0_i32_40 = arith.constant 0 : i32
      %64 = tpu.memref_slice %arg12[%37, %c0_i32_40] : memref<128x32xf32, #tpu.memory_space<vmem>> -> memref<1x32xf32, #tpu.memory_space<vmem>>
      %65 = tpu.memref_squeeze %64 : memref<1x32xf32, #tpu.memory_space<vmem>> -> memref<32xf32, #tpu.memory_space<vmem>>
      %66 = tpu.memref_slice %arg13[%c0_i32_38] : memref<1x!tpu.dma_semaphore, #tpu.memory_space<semaphore_mem>> -> memref<1x!tpu.dma_semaphore, #tpu.memory_space<semaphore_mem>>
      %67 = tpu.memref_squeeze %66 : memref<1x!tpu.dma_semaphore, #tpu.memory_space<semaphore_mem>> -> memref<!tpu.dma_semaphore, #tpu.memory_space<semaphore_mem>>
      tpu.enqueue_dma source(%63 : memref<32xf32, #tpu.memory_space<any>>) target(%65 : memref<32xf32, #tpu.memory_space<vmem>>) target_semaphore(%67 : memref<!tpu.dma_semaphore, #tpu.memory_space<semaphore_mem>>)
    }
    %c128_i32_1 = arith.constant 128 : i32
    %c0_i32_2 = arith.constant 0 : i32
    %c128_i32_3 = arith.constant 128 : i32
    %2 = arith.addi %c0_i32_2, %c128_i32_3 : i32
    %c1_i32_4 = arith.constant 1 : i32
    scf.for %arg14 = %c0_i32_2 to %2 step %c1_i32_4  : i32 {
      %c1_i32_27 = arith.constant 1 : i32
      %36 = arith.muli %arg14, %c1_i32_27 : i32
      %c0_i32_28 = arith.constant 0 : i32
      %37 = arith.addi %c0_i32_28, %36 : i32
      %c0_i32_29 = arith.constant 0 : i32
      %c0_i32_30 = arith.constant 0 : i32
      %c0_i32_31 = arith.constant 0 : i32
      %38 = tpu.memref_slice %arg6[%c0_i32_29, %c0_i32_31] : memref<64x32xf32, #tpu.memory_space<any>> -> memref<1x32xf32, #tpu.memory_space<any>>
      %39 = tpu.memref_squeeze %38 : memref<1x32xf32, #tpu.memory_space<any>> -> memref<32xf32, #tpu.memory_space<any>>
      %c0_i32_32 = arith.constant 0 : i32
      %40 = tpu.memref_slice %arg9[%37, %c0_i32_32] : memref<128x32xf32, #tpu.memory_space<vmem>> -> memref<1x32xf32, #tpu.memory_space<vmem>>
      %41 = tpu.memref_squeeze %40 : memref<1x32xf32, #tpu.memory_space<vmem>> -> memref<32xf32, #tpu.memory_space<vmem>>
      %42 = tpu.memref_slice %arg13[%c0_i32_30] : memref<1x!tpu.dma_semaphore, #tpu.memory_space<semaphore_mem>> -> memref<1x!tpu.dma_semaphore, #tpu.memory_space<semaphore_mem>>
      %43 = tpu.memref_squeeze %42 : memref<1x!tpu.dma_semaphore, #tpu.memory_space<semaphore_mem>> -> memref<!tpu.dma_semaphore, #tpu.memory_space<semaphore_mem>>
      tpu.wait_dma2 semaphore(%43 : memref<!tpu.dma_semaphore, #tpu.memory_space<semaphore_mem>>) src(%39 : memref<32xf32, #tpu.memory_space<any>>) dst(%41 : memref<32xf32, #tpu.memory_space<vmem>>)
      %c0_i32_33 = arith.constant 0 : i32
      %c0_i32_34 = arith.constant 0 : i32
      %c0_i32_35 = arith.constant 0 : i32
      %44 = tpu.memref_slice %arg7[%c0_i32_33, %c0_i32_35] : memref<64x32xf32, #tpu.memory_space<any>> -> memref<1x32xf32, #tpu.memory_space<any>>
      %45 = tpu.memref_squeeze %44 : memref<1x32xf32, #tpu.memory_space<any>> -> memref<32xf32, #tpu.memory_space<any>>
      %c0_i32_36 = arith.constant 0 : i32
      %46 = tpu.memref_slice %arg10[%37, %c0_i32_36] : memref<128x32xf32, #tpu.memory_space<vmem>> -> memref<1x32xf32, #tpu.memory_space<vmem>>
      %47 = tpu.memref_squeeze %46 : memref<1x32xf32, #tpu.memory_space<vmem>> -> memref<32xf32, #tpu.memory_space<vmem>>
      %48 = tpu.memref_slice %arg13[%c0_i32_34] : memref<1x!tpu.dma_semaphore, #tpu.memory_space<semaphore_mem>> -> memref<1x!tpu.dma_semaphore, #tpu.memory_space<semaphore_mem>>
      %49 = tpu.memref_squeeze %48 : memref<1x!tpu.dma_semaphore, #tpu.memory_space<semaphore_mem>> -> memref<!tpu.dma_semaphore, #tpu.memory_space<semaphore_mem>>
      tpu.wait_dma2 semaphore(%49 : memref<!tpu.dma_semaphore, #tpu.memory_space<semaphore_mem>>) src(%45 : memref<32xf32, #tpu.memory_space<any>>) dst(%47 : memref<32xf32, #tpu.memory_space<vmem>>)
      %c0_i32_37 = arith.constant 0 : i32
      %c0_i32_38 = arith.constant 0 : i32
      %c0_i32_39 = arith.constant 0 : i32
      %50 = tpu.memref_slice %arg6[%c0_i32_37, %c0_i32_39] : memref<64x32xf32, #tpu.memory_space<any>> -> memref<1x32xf32, #tpu.memory_space<any>>
      %51 = tpu.memref_squeeze %50 : memref<1x32xf32, #tpu.memory_space<any>> -> memref<32xf32, #tpu.memory_space<any>>
      %c0_i32_40 = arith.constant 0 : i32
      %52 = tpu.memref_slice %arg11[%37, %c0_i32_40] : memref<128x32xf32, #tpu.memory_space<vmem>> -> memref<1x32xf32, #tpu.memory_space<vmem>>
      %53 = tpu.memref_squeeze %52 : memref<1x32xf32, #tpu.memory_space<vmem>> -> memref<32xf32, #tpu.memory_space<vmem>>
      %54 = tpu.memref_slice %arg13[%c0_i32_38] : memref<1x!tpu.dma_semaphore, #tpu.memory_space<semaphore_mem>> -> memref<1x!tpu.dma_semaphore, #tpu.memory_space<semaphore_mem>>
      %55 = tpu.memref_squeeze %54 : memref<1x!tpu.dma_semaphore, #tpu.memory_space<semaphore_mem>> -> memref<!tpu.dma_semaphore, #tpu.memory_space<semaphore_mem>>
      tpu.wait_dma2 semaphore(%55 : memref<!tpu.dma_semaphore, #tpu.memory_space<semaphore_mem>>) src(%51 : memref<32xf32, #tpu.memory_space<any>>) dst(%53 : memref<32xf32, #tpu.memory_space<vmem>>)
      %c0_i32_41 = arith.constant 0 : i32
      %c0_i32_42 = arith.constant 0 : i32
      %c0_i32_43 = arith.constant 0 : i32
      %56 = tpu.memref_slice %arg7[%c0_i32_41, %c0_i32_43] : memref<64x32xf32, #tpu.memory_space<any>> -> memref<1x32xf32, #tpu.memory_space<any>>
      %57 = tpu.memref_squeeze %56 : memref<1x32xf32, #tpu.memory_space<any>> -> memref<32xf32, #tpu.memory_space<any>>
      %c0_i32_44 = arith.constant 0 : i32
      %58 = tpu.memref_slice %arg12[%37, %c0_i32_44] : memref<128x32xf32, #tpu.memory_space<vmem>> -> memref<1x32xf32, #tpu.memory_space<vmem>>
      %59 = tpu.memref_squeeze %58 : memref<1x32xf32, #tpu.memory_space<vmem>> -> memref<32xf32, #tpu.memory_space<vmem>>
      %60 = tpu.memref_slice %arg13[%c0_i32_42] : memref<1x!tpu.dma_semaphore, #tpu.memory_space<semaphore_mem>> -> memref<1x!tpu.dma_semaphore, #tpu.memory_space<semaphore_mem>>
      %61 = tpu.memref_squeeze %60 : memref<1x!tpu.dma_semaphore, #tpu.memory_space<semaphore_mem>> -> memref<!tpu.dma_semaphore, #tpu.memory_space<semaphore_mem>>
      tpu.wait_dma2 semaphore(%61 : memref<!tpu.dma_semaphore, #tpu.memory_space<semaphore_mem>>) src(%57 : memref<32xf32, #tpu.memory_space<any>>) dst(%59 : memref<32xf32, #tpu.memory_space<vmem>>)
    }
    %c128_i32_5 = arith.constant 128 : i32
    %c0 = arith.constant 0 : index
    %c0_6 = arith.constant 0 : index
    %3 = vector.load %arg9[%c0, %c0_6] : memref<128x32xf32, #tpu.memory_space<vmem>>, vector<128x32xf32>
    %c0_7 = arith.constant 0 : index
    %c0_8 = arith.constant 0 : index
    %4 = vector.load %arg10[%c0_7, %c0_8] : memref<128x32xf32, #tpu.memory_space<vmem>>, vector<128x32xf32>
    %c0_9 = arith.constant 0 : index
    %c0_10 = arith.constant 0 : index
    %5 = vector.load %arg11[%c0_9, %c0_10] : memref<128x32xf32, #tpu.memory_space<vmem>>, vector<128x32xf32>
    %c0_11 = arith.constant 0 : index
    %c0_12 = arith.constant 0 : index
    %6 = vector.load %arg12[%c0_11, %c0_12] : memref<128x32xf32, #tpu.memory_space<vmem>>, vector<128x32xf32>
    %c0_13 = arith.constant 0 : index
    %c0_14 = arith.constant 0 : index
    %c0_15 = arith.constant 0 : index
    %7 = vector.load %arg3[%c0_13, %c0_14, %c0_15] : memref<1x128x1xi32, #tpu.memory_space<vmem>>, vector<1x128x1xi32>
    %8 = vector.shape_cast %7 : vector<1x128x1xi32> to vector<128x1xi32>
    %9 = tpu.iota {dimensions = array<i32: 1>} : vector<128x8xi32>
    %10 = vector.broadcast %8 : vector<128x1xi32> to vector<128x8xi32>
    %11 = arith.cmpi eq, %10, %9 : vector<128x8xi32>
    %12 = arith.extui %11 : vector<128x8xi1> to vector<128x8xi32>
    %13 = arith.sitofp %12 : vector<128x8xi32> to vector<128x8xf32>
    %c0_16 = arith.constant 0 : index
    %c0_17 = arith.constant 0 : index
    %14 = vector.load %arg4[%c0_16, %c0_17] : memref<8x32xf32, #tpu.memory_space<vmem>>, vector<8x32xf32>
    %cst = arith.constant dense<0.000000e+00> : vector<128x32xf32>
    %15 = tpu.matmul %13, %14, %cst {dimension_numbers = #tpu.dot_dimension_numbers<[1], [0], [0], [1], [0, 0, 1, 1], [], []>} : vector<128x8xf32>, vector<8x32xf32>, vector<128x32xf32> -> vector<128x32xf32>
    %c0_18 = arith.constant 0 : index
    %c0_19 = arith.constant 0 : index
    %16 = vector.load %arg5[%c0_18, %c0_19] : memref<8x32xf32, #tpu.memory_space<vmem>>, vector<8x32xf32>
    %cst_20 = arith.constant dense<0.000000e+00> : vector<128x32xf32>
    %17 = tpu.matmul %13, %16, %cst_20 {dimension_numbers = #tpu.dot_dimension_numbers<[1], [0], [0], [1], [0, 0, 1, 1], [], []>} : vector<128x8xf32>, vector<8x32xf32>, vector<128x32xf32> -> vector<128x32xf32>
    %18 = arith.mulf %15, %5 : vector<128x32xf32>
    %19 = arith.mulf %17, %6 : vector<128x32xf32>
    %20 = arith.addf %18, %19 : vector<128x32xf32>
    %21 = arith.mulf %3, %20 : vector<128x32xf32>
    %22 = arith.mulf %15, %6 : vector<128x32xf32>
    %23 = arith.mulf %17, %5 : vector<128x32xf32>
    %24 = arith.subf %22, %23 : vector<128x32xf32>
    %25 = arith.mulf %4, %24 : vector<128x32xf32>
    %26 = arith.addf %21, %25 : vector<128x32xf32>
    %cst_21 = arith.constant 1.000000e+00 : f32
    %27 = vector.broadcast %cst_21 : f32 to vector<1x32xf32>
    %cst_22 = arith.constant dense<0.000000e+00> : vector<1x128xf32>
    %28 = tpu.matmul %27, %26, %cst_22 {dimension_numbers = #tpu.dot_dimension_numbers<[1], [1], [0], [0], [0, 0, 1, 0], [], []>} : vector<1x32xf32>, vector<128x32xf32>, vector<1x128xf32> -> vector<1x128xf32>
    %29 = arith.negf %28 : vector<1x128xf32>
    %30 = math.exp %29 : vector<1x128xf32>
    %cst_23 = arith.constant 1.000000e+00 : f32
    %31 = vector.broadcast %cst_23 : f32 to vector<1x128xf32>
    %32 = arith.addf %31, %30 : vector<1x128xf32>
    %33 = arith.divf %31, %32 : vector<1x128xf32>
    %34 = vector.shape_cast %33 : vector<1x128xf32> to vector<1x1x128xf32>
    %c0_24 = arith.constant 0 : index
    %c0_25 = arith.constant 0 : index
    %c0_26 = arith.constant 0 : index
    %35 = vector.load %arg8[%c0_24, %c0_25, %c0_26] : memref<1x1x128xf32, #tpu.memory_space<vmem>>, vector<1x1x128xf32>
    tpu.vector_store %arg8[%c0_24, %c0_25, %c0_26], %34 {strides = array<i32>} : memref<1x1x128xf32, #tpu.memory_space<vmem>>, vector<1x1x128xf32>,
    return
  }
  func.func @transform_0(%arg0: i32, %arg1: memref<128xi32, #tpu.memory_space<smem>>, %arg2: memref<128xi32, #tpu.memory_space<smem>>) -> (i32, i32, i32) {
    %c0_i32 = arith.constant 0 : i32
    %c0_i32_0 = arith.constant 0 : i32
    %c0_i32_1 = arith.constant 0 : i32
    return %arg0, %c0_i32, %c0_i32_0 : i32, i32, i32
  }
  func.func @transform_1(%arg0: i32, %arg1: memref<128xi32, #tpu.memory_space<smem>>, %arg2: memref<128xi32, #tpu.memory_space<smem>>) -> (i32, i32) {
    %c0_i32 = arith.constant 0 : i32
    %c0_i32_0 = arith.constant 0 : i32
    %c0_i32_1 = arith.constant 0 : i32
    return %c0_i32, %c0_i32_0 : i32, i32
  }
  func.func @transform_2(%arg0: i32, %arg1: memref<128xi32, #tpu.memory_space<smem>>, %arg2: memref<128xi32, #tpu.memory_space<smem>>) -> (i32, i32) {
    %c0_i32 = arith.constant 0 : i32
    %c0_i32_0 = arith.constant 0 : i32
    %c0_i32_1 = arith.constant 0 : i32
    return %c0_i32, %c0_i32_0 : i32, i32
  }
  func.func @transform_5(%arg0: i32, %arg1: memref<128xi32, #tpu.memory_space<smem>>, %arg2: memref<128xi32, #tpu.memory_space<smem>>) -> (i32, i32, i32) {
    %c0_i32 = arith.constant 0 : i32
    %c0_i32_0 = arith.constant 0 : i32
    %c0_i32_1 = arith.constant 0 : i32
    return %arg0, %c0_i32, %c0_i32_0 : i32, i32, i32
  }
}

</mosaic_0001>

<bundles_post_ra>
// kernel: tpu_custom_call.1
= control target key start
LH: loop header
LB: loop body
LE: loop exit
PB: predicated region body
PF: predicated region fallthrough
CT: control target
= control target key end

     0   :  { %s1892_s0 = inlined_call_operand.vmem [shape: s32[128], index: 0, kind: input, shape index: {}]   ;;  %s1893_s2 = inlined_call_operand.vmem [shape: s32[1,128,1], index: 2, kind: input, shape index: {}]   ;;  %s1894_s3 = inlined_call_operand.vmem [shape: f32[8,32], index: 3, kind: input, shape index: {}]   ;;  %s1895_s4 = inlined_call_operand.vmem [shape: f32[8,32], index: 4, kind: input, shape index: {}]   ;;  %s1896_s5 = inlined_call_operand.vmem [shape: f32[64,32], index: 5, kind: input, shape index: {}]   ;;  %s1897_s6 = inlined_call_operand.vmem [shape: f32[64,32], index: 6, kind: input, shape index: {}]   ;;  %s1898_s7 = inlined_call_operand.hbm [shape: f32[1,1,128], index: 7, kind: output, shape index: {}]   ;;  %s1899_s1 = inlined_call_operand.vmem [shape: s32[128], index: 1, kind: input, shape index: {}]  }
   0x1   :  { %s12_s26 = sshll.u32 %s1892_s0, 4  ;;  %s16_s29 = sshll.u32 %s1899_s1, 4  ;;  %s13_s26 = int_to_ptr.vmem [resolvable:$true] %s12_s26  ;;  %s17_s29 = int_to_ptr.vmem [resolvable:$true] %s16_s29 }
   0x2   :  { %s1374_s30 = scalar_lea.vmem %s13_s26, 16  ;;  %p1379_p1 = scmp.lt.s32.totalorder %s13_s26, %s13_s26 }
   0x3   :  { %p1375_p0 = scmp.ne.s32.totalorder %s13_s26, %s1374_s30  ;;  %p1380_p2 = scmp.lt.s32.totalorder %s1374_s30, %s1374_s30 }
   0x5   :  { %p1381_p3 = por %p1380_p2, %p1379_p1 }
   0x7   :  { %p1382_p4 = pnand %p1381_p3, %p1375_p0 }
   0x9   :  { %1385 = shalt.err (!%p1382_p4)  }
   0xa   :  { %s1442_s8 = smov [#allocation8]   ;;  %s1386_s9 = scalar_lea.vmem %s17_s29, 16 }
   0xb   :  { %15 = dma.vmem_to_smem %s13_s26, 16, %s1442_s8, [#allocation7] }
   0xc   :  { %p1387_p5 = scmp.ne.s32.totalorder %s17_s29, %s1386_s9  ;;  %p1391_p6 = scmp.lt.s32.totalorder %s17_s29, %s17_s29 }
   0xd   :  { %p1392_p7 = scmp.lt.s32.totalorder %s1386_s9, %s1386_s9 }
   0xf   :  { %p1393_p8 = por %p1392_p7, %p1391_p6 }
  0x11   :  { %p1394_p9 = pnand %p1393_p8, %p1387_p5 }
  0x13   :  { %1397 = shalt.err (!%p1394_p9)  }
  0x14   :  { %s1443_s0 = smov [#allocation9]  }
  0x15   :  { %19 = dma.vmem_to_smem %s17_s29, 16, %s1443_s0, [#allocation7] }
  0x16   :  { %1428 = dma.done.wait [#allocation7], 32 }
  0x17   :  { %1429 = vsyncadd [#allocation7], 4294967264 }
  0x18   :  { %21 = sfence }
  0x19   :  { %22 = vsyncpa [#allocation11], 0  ;;  %s1434_s1 = smov 0  }
  0x1a LB: > { %s37_s10 = sld [smem:[#allocation8 + %s1436_s1]]  ;;  %s40_s15 = scalar_lea.vmem [#allocation2], %s1436_s1  ;;  %s1436_s1 = sphi %s1434_s1, %s35_s1  }
  0x1b   : > { %s38_s11 = sld [smem:[#allocation9 + %s1436_s1]] }
  0x20   : > { %s39_s14 = scalar_lea.vmem %s1896_s5, %s37_s10 }
  0x21   : > { %v58_v0 = vld [vmem:[%s39_s14] sm:$0x1] }
  0x22   : > { %59 = vst [vmem:[%s40_s15] sm:$0x1] %v58_v0 }
  0x23   : > { %84 = vsyncadd [#allocation6], 16  ;;  %s85_s18 = scalar_lea.vmem %s1897_s6, %s37_s10  ;;  %s86_s19 = scalar_lea.vmem [#allocation3], %s1436_s1 }
  0x24   : > { %v104_v1 = vld [vmem:[%s85_s18] sm:$0x1] }
  0x25   : > { %105 = vst [vmem:[%s86_s19] sm:$0x1] %v104_v1 }
  0x26   : > { %130 = vsyncadd [#allocation6], 16  ;;  %s131_s22 = scalar_lea.vmem %s1896_s5, %s38_s11  ;;  %s132_s23 = scalar_lea.vmem [#allocation4], %s1436_s1 }
  0x27   : > { %v150_v2 = vld [vmem:[%s131_s22] sm:$0x1] }
  0x28   : > { %151 = vst [vmem:[%s132_s23] sm:$0x1] %v150_v2 }
  0x29   : > { %176 = vsyncadd [#allocation6], 16  ;;  %s177_s26 = scalar_lea.vmem %s1897_s6, %s38_s11  ;;  %s178_s27 = scalar_lea.vmem [#allocation5], %s1436_s1 }
  0x2a   : > { %v196_v3 = vld [vmem:[%s177_s26] sm:$0x1] }
  0x2b   : > { %197 = vst [vmem:[%s178_s27] sm:$0x1] %v196_v3 }
  0x2c   : > { %222 = vsyncadd [#allocation6], 16  ;;  %s35_s1 = sadd.s32 1, %s1436_s1  }
  0x2d   : > { %p32_p10 = scmp.ge.s32.totalorder %s35_s1, 128  }
  0x2e   :  { %s1438_s28 = smov (%p32_p10), 0  }
  0x2f   :  { %34 = sbr.rel (!%p32_p10) target bundleno = 26 (0x1a), region = 214 }
  0x36 LB: > { %1430 = dma.done.wait [#allocation6], 64  ;;  %s1440_s28 = sphi %s1438_s28, %s228_s28  }
  0x37   : > { %1431 = vsyncadd [#allocation6], 4294967232  ;;  %s228_s28 = sadd.s32 1, %s1440_s28  }
  0x38   : > { %p225_p11 = scmp.ge.s32.totalorder %s228_s28, 128  }
  0x39   :  { %v303_v4 = vld [vmem:[%s1893_s2 + $0x10] sm:$0xff] (%p225_p11)  ;;  %v301_v5 = vld [vmem:[%s1893_s2] sm:$0xff] (%p225_p11)  ;;  %v1444_v6 = vmov (%p225_p11), 0   ;;  %v304_v7 = vld [vmem:[%s1893_s2 + $0x18] sm:$0xff] (%p225_p11)  ;;  %v317_v23 = vlaneseq (%p225_p11)  ;;  %vm416_vm0 = vcmask (%p225_p11), 64512   ;;  %v1445_v27 = vmov (%p225_p11), 0.0  }
  0x3a   :  { %227 = sbr.rel (!%p225_p11) target bundleno = 54 (0x36), region = 225  ;;  %1369 = vset.pattern.permute.xlu1 (%p225_p11), %v1444_v6  ;;  %1368 = vset.pattern.permute.xlu0 (%p225_p11), %v1444_v6  ;;  %v302_v8 = vld [vmem:[%s1893_s2 + $0x8] sm:$0xff] (%p225_p11)  ;;  %v415_v9 = vld [vmem:[%s1894_s3] sm:$0xff] (%p225_p11)  ;;  %v308_v13 = vld [vmem:[%s1893_s2 + $0x38] sm:$0xff] (%p225_p11)  ;;  %v1900_v58 = vmov (%p225_p11), 0.0|0.0  }
  0x3b   :  { %326 = vperm.xlu1 (%p225_p11), %1369, %v303_v4   ;;  %320 = vperm.xlu0 (%p225_p11), %1368, %v301_v5   ;;  %v306_v10 = vld [vmem:[%s1893_s2 + $0x28] sm:$0xff] (%p225_p11)  ;;  %v305_v11 = vld [vmem:[%s1893_s2 + $0x20] sm:$0xff] (%p225_p11)  ;;  %v307_v14 = vld [vmem:[%s1893_s2 + $0x30] sm:$0xff] (%p225_p11)  ;;  %v1562_v24 = vand.u32 (%p225_p11), 127, %v317_v23 }
  0x3c   :  { %1225 = vmatprep.subr.mxu1 (%p225_p11), %v415_v9  ;;  %v610_v12 = vld [vmem:[%s1895_s4] sm:$0xff] (%p225_p11)  ;;  %v310_v15 = vld [vmem:[%s1893_s2 + $0x48] sm:$0xff] (%p225_p11)  ;;  %v312_v17 = vld [vmem:[%s1893_s2 + $0x58] sm:$0xff] (%p225_p11)  ;;  %1312 = vmatprep.subr.bf16.mxu0 (%p225_p11), %v1900_v58 }
  0x3d   :  { %1226 = vmatpush3.msra.mxu1 (%p225_p11), %v415_v9  ;;  %v309_v16 = vld [vmem:[%s1893_s2 + $0x40] sm:$0xff] (%p225_p11)  ;;  %v311_v18 = vld [vmem:[%s1893_s2 + $0x50] sm:$0xff] (%p225_p11)  ;;  %v314_v19 = vld [vmem:[%s1893_s2 + $0x68] sm:$0xff] (%p225_p11) }
  0x3e   :  { %1251 = vmatprep.subr.mxu1 (%p225_p11), %v610_v12  ;;  %v313_v20 = vld [vmem:[%s1893_s2 + $0x60] sm:$0xff] (%p225_p11)  ;;  %v316_v21 = vld [vmem:[%s1893_s2 + $0x78] sm:$0xff] (%p225_p11)  ;;  %v315_v22 = vld [vmem:[%s1893_s2 + $0x70] sm:$0xff] (%p225_p11)  ;;  %s1449_s2 = smov (%p225_p11), [#allocation10]  }
  0x3f   :  { %329 = vperm.xlu1 (%p225_p11), %1369, %v304_v7   ;;  %323 = vperm.xlu0 (%p225_p11), %1368, %v302_v8   ;;  %v270_v7 = vld [vmem:[#allocation4 + $0x8] sm:$0xff] (%p225_p11)  ;;  %v1654_v23 = vld [vmem:[#allocation5 + $0x38] sm:$0xff] (%p225_p11)  ;;  %v253_v58 = vld [vmem:[#allocation3] sm:$0xff] (%p225_p11)  ;;  %s1035_s1 = sshll.u32 (%p225_p11), %s1449_s2, 4  ;;  %s1036_s1 = int_to_ptr.vmem [resolvable:$true] %s1035_s1 }
  0x40   :  { %v286_v8 = vld [vmem:[#allocation5 + $0x8] sm:$0xff] (%p225_p11)  ;;  %s1398_s10 = scalar_lea.vmem (%p225_p11), %s1036_s1, 16  ;;  %s1402_s11 = scalar_lea.vmem (%p225_p11), %s1036_s1, 32 }
  0x41   :  { %p1399_p12 = scmp.ne.s32.totalorder %s1036_s1, %s1398_s10  ;;  %p1403_p13 = scmp.lt.s32.totalorder %s1036_s1, %s1036_s1 }
  0x42   :  { %p1404_p0 = scmp.lt.s32.totalorder %s1402_s11, %s1398_s10 }
  0x43   :  { %335 = vperm.xlu1 %1369, %v306_v10   ;;  %332 = vperm.xlu0 %1368, %v305_v11   ;;  %v269_v10 = vld [vmem:[#allocation4] sm:$0xff] }
  0x44   :  { %v285_v11 = vld [vmem:[#allocation5] sm:$0xff]  ;;  %p1405_p1 = por %p1404_p0, %p1403_p13 }
  0x46   :  { %p1406_p2 = pnand %p1405_p1, %p1399_p12 }
  0x47   :  { %341 = vperm.xlu1 %1369, %v308_v13   ;;  %338 = vperm.xlu0 %1368, %v307_v14   ;;  %v1638_v14 = vld [vmem:[#allocation5 + $0x18] sm:$0xff] }
  0x4b   :  { %347 = vperm.xlu1 %1369, %v310_v15   ;;  %344 = vperm.xlu0 %1368, %v309_v16   ;;  %v1640_v15 = vld [vmem:[#allocation4 + $0x10] sm:$0xff] }
  0x4c   :  { %v1642_v16 = vld [vmem:[#allocation5 + $0x10] sm:$0xff] }
  0x4f   :  { %353 = vperm.xlu1 %1369, %v312_v17   ;;  %350 = vperm.xlu0 %1368, %v311_v18   ;;  %v1644_v17 = vld [vmem:[#allocation4 + $0x28] sm:$0xff] }
  0x50   :  { %v1646_v18 = vld [vmem:[#allocation5 + $0x28] sm:$0xff] }
  0x53   :  { %359 = vperm.xlu1 %1369, %v314_v19   ;;  %356 = vperm.xlu0 %1368, %v313_v20   ;;  %v1648_v19 = vld [vmem:[#allocation4 + $0x20] sm:$0xff] }
  0x57   :  { %365 = vperm.xlu1 %1369, %v316_v21   ;;  %362 = vperm.xlu0 %1368, %v315_v22   ;;  %v1650_v21 = vld [vmem:[#allocation5 + $0x20] sm:$0xff]  ;;  %v1652_v22 = vld [vmem:[#allocation4 + $0x38] sm:$0xff] }
  0xba   :  { %v327_v25 = vpop.permute.xlu1 %326  ;;  %v321_v26 = vpop.permute.xlu0 %320 }
  0xbb   :  { %vm367_vm1 = vcmp.eq.s32.totalorder %v321_v26, %v1562_v24  ;;  %vm369_vm2 = vcmp.eq.s32.totalorder %v327_v25, %v1562_v24 }
  0xbc   :  { %v1107_v28 = vsel %vm367_vm1, 1.0, %v1445_v27  ;;  %v1109_v31 = vsel %vm369_vm2, 1.0, %v1445_v27  ;;  %vm1447_vm2 = vmmov 0  }
  0xbd   :  { %1227 = vmatprep.mubr.msk.f32.mxu1 %vm416_vm0, %v1107_v28  ;;  %1309 = vmatprep.mubr.msk.f32.mxu0 %vm1447_vm2, %v1445_v27 }
  0xbe   :  { %v330_v29 = vpop.permute.xlu1 %329  ;;  %v324_v30 = vpop.permute.xlu0 %323 }
  0xbf   :  { %vm368_vm3 = vcmp.eq.s32.totalorder %v324_v30, %v1562_v24  ;;  %vm370_vm4 = vcmp.eq.s32.totalorder %v330_v29, %v1562_v24  ;;  %v1661_v29 = vld [vmem:[#allocation4 + $0x30] sm:$0xff] }
  0xc0   :  { %v1108_v32 = vsel %vm368_vm3, 1.0, %v1445_v27  ;;  %v1110_v35 = vsel %vm370_vm4, 1.0, %v1445_v27  ;;  %v1663_v30 = vld [vmem:[#allocation5 + $0x30] sm:$0xff] }
  0xc1   :  { %1228 = vmatmul.mubr.msk.f32.vlgmr.msra.gmra.mrb[0].mxu1 %vm416_vm0, %v1108_v32 }
  0xc2   :  { %1252 = vmatpush3.msra.mxu1 %v610_v12  ;;  %v336_v33 = vpop.permute.xlu1 %335  ;;  %1230 = vmatprep.mubr.msk.f32.mxu1 %vm416_vm0, %v1109_v31  ;;  %v333_v34 = vpop.permute.xlu0 %332  ;;  %v1634_v12 = vld [vmem:[#allocation4 + $0x18] sm:$0xff] }
  0xc3   :  { %vm371_vm5 = vcmp.eq.s32.totalorder %v333_v34, %v1562_v24  ;;  %vm372_vm6 = vcmp.eq.s32.totalorder %v336_v33, %v1562_v24 }
  0xc4   :  { %v1111_v36 = vsel %vm371_vm5, 1.0, %v1445_v27  ;;  %v1112_v39 = vsel %vm372_vm6, 1.0, %v1445_v27 }
  0xc5   :  { %1231 = vmatmul.mubr.msk.f32.gmra.mrb[2].mxu1 %vm416_vm0, %v1110_v35 }
  0xc6   :  { %v342_v37 = vpop.permute.xlu1 %341  ;;  %1233 = vmatprep.mubr.msk.f32.mxu1 %vm416_vm0, %v1111_v36  ;;  %v339_v38 = vpop.permute.xlu0 %338 }
  0xc7   :  { %vm373_vm7 = vcmp.eq.s32.totalorder %v339_v38, %v1562_v24  ;;  %vm374_vm8 = vcmp.eq.s32.totalorder %v342_v37, %v1562_v24  ;;  %v1681_v37 = vld [vmem:[#allocation5 + $0x48] sm:$0xff]  ;;  %v1683_v38 = vld [vmem:[#allocation4 + $0x40] sm:$0xff] }
  0xc8   :  { %v1113_v40 = vsel %vm373_vm7, 1.0, %v1445_v27  ;;  %v1114_v43 = vsel %vm374_vm8, 1.0, %v1445_v27 }
  0xc9   :  { %1234 = vmatmul.mubr.msk.f32.gmra.mrb[4].mxu1 %vm416_vm0, %v1112_v39 }
  0xca   :  { %v348_v41 = vpop.permute.xlu1 %347  ;;  %1236 = vmatprep.mubr.msk.f32.mxu1 %vm416_vm0, %v1113_v40  ;;  %v345_v42 = vpop.permute.xlu0 %344 }
  0xcb   :  { %vm375_vm9 = vcmp.eq.s32.totalorder %v345_v42, %v1562_v24  ;;  %vm376_vm10 = vcmp.eq.s32.totalorder %v348_v41, %v1562_v24 }
  0xcc   :  { %v1115_v44 = vsel %vm375_vm9, 1.0, %v1445_v27  ;;  %v1116_v47 = vsel %vm376_vm10, 1.0, %v1445_v27 }
  0xcd   :  { %1237 = vmatmul.mubr.msk.f32.gmra.mrb[6].mxu1 %vm416_vm0, %v1114_v43 }
  0xce   :  { %v354_v45 = vpop.permute.xlu1 %353  ;;  %1239 = vmatprep.mubr.msk.f32.mxu1 %vm416_vm0, %v1115_v44  ;;  %v351_v46 = vpop.permute.xlu0 %350 }
  0xcf   :  { %vm377_vm11 = vcmp.eq.s32.totalorder %v351_v46, %v1562_v24  ;;  %vm378_vm12 = vcmp.eq.s32.totalorder %v354_v45, %v1562_v24 }
  0xd0   :  { %v1117_v48 = vsel %vm377_vm11, 1.0, %v1445_v27  ;;  %v1118_v51 = vsel %vm378_vm12, 1.0, %v1445_v27 }
  0xd1   :  { %1240 = vmatmul.mubr.msk.f32.gmra.mrb[8].mxu1 %vm416_vm0, %v1116_v47 }
  0xd2   :  { %v360_v49 = vpop.permute.xlu1 %359  ;;  %1242 = vmatprep.mubr.msk.f32.mxu1 %vm416_vm0, %v1117_v48  ;;  %v357_v50 = vpop.permute.xlu0 %356 }
  0xd3   :  { %vm379_vm13 = vcmp.eq.s32.totalorder %v357_v50, %v1562_v24  ;;  %vm380_vm14 = vcmp.eq.s32.totalorder %v360_v49, %v1562_v24  ;;  %v1713_v49 = vld [vmem:[#allocation5 + $0x58] sm:$0xff]  ;;  %v1715_v50 = vld [vmem:[#allocation4 + $0x50] sm:$0xff] }
  0xd4   :  { %v1119_v52 = vsel %vm379_vm13, 1.0, %v1445_v27  ;;  %v1120_v55 = vsel %vm380_vm14, 1.0, %v1445_v27  ;;  %1906 = vst [vmem:[#allocation20_spill] sm:$0xff] %v1715_v50 }
  0xd5   :  { %1243 = vmatmul.mubr.msk.f32.gmra.mrb[10].mxu1 %vm416_vm0, %v1118_v51 }
  0xd6   :  { %v366_v53 = vpop.permute.xlu1 %365  ;;  %1245 = vmatprep.mubr.msk.f32.mxu1 %vm416_vm0, %v1119_v52  ;;  %v363_v54 = vpop.permute.xlu0 %362 }
  0xd7   :  { %vm381_vm15 = vcmp.eq.s32.totalorder %v363_v54, %v1562_v24  ;;  %vm382_vm1 = vcmp.eq.s32.totalorder %v366_v53, %v1562_v24  ;;  %v1723_v54 = vld [vmem:[#allocation5 + $0x50] sm:$0xff] }
  0xd8   :  { %v1121_v56 = vsel %vm381_vm15, 1.0, %v1445_v27  ;;  %v1122_v57 = vsel %vm382_vm1, 1.0, %v1445_v27  ;;  %1907 = vst [vmem:[#allocation21_spill] sm:$0xff] %v1723_v54 }
  0xd9   :  { %1246 = vmatmul.mubr.msk.f32.gmra.mrb[12].mxu1 %vm416_vm0, %v1120_v55 }
  0xda   :  { %1248 = vmatprep.mubr.msk.f32.mxu1 %vm416_vm0, %v1121_v56 }
  0xdd   :  { %1249 = vmatmul.mubr.msk.f32.gmra.mrb[14].mxu1 %vm416_vm0, %v1122_v57 }
  0xde   :  { %1253 = vmatprep.mubr.msk.f32.mxu1 %vm416_vm0, %v1107_v28 }
  0xe1   :  { %1254 = vmatmul.mubr.msk.f32.vlgmr.msra.gmra.mrb[16].mxu1 %vm416_vm0, %v1108_v32 }
  0xe2   :  { %1256 = vmatprep.mubr.msk.f32.mxu1 %vm416_vm0, %v1109_v31  ;;  %v1665_v31 = vld [vmem:[#allocation4 + $0x48] sm:$0xff] }
  0xe5   :  { %1257 = vmatmul.mubr.msk.f32.gmra.mrb[18].mxu1 %vm416_vm0, %v1110_v35 }
  0xe6   :  { %1259 = vmatprep.mubr.msk.f32.mxu1 %vm416_vm0, %v1111_v36 }
  0xe9   :  { %1260 = vmatmul.mubr.msk.f32.gmra.mrb[20].mxu1 %vm416_vm0, %v1112_v39 }
  0xea   :  { %1262 = vmatprep.mubr.msk.f32.mxu1 %vm416_vm0, %v1113_v40 }
  0xed   :  { %1263 = vmatmul.mubr.msk.f32.gmra.mrb[22].mxu1 %vm416_vm0, %v1114_v43  ;;  %v1697_v43 = vld [vmem:[#allocation5 + $0x40] sm:$0xff] }
  0xee   :  { %1265 = vmatprep.mubr.msk.f32.mxu1 %vm416_vm0, %v1115_v44  ;;  %v1699_v44 = vld [vmem:[#allocation4 + $0x58] sm:$0xff] }
  0xf1   :  { %1266 = vmatmul.mubr.msk.f32.gmra.mrb[24].mxu1 %vm416_vm0, %v1116_v47 }
  0xf2   :  { %1268 = vmatprep.mubr.msk.f32.mxu1 %vm416_vm0, %v1117_v48 }
  0xf5   :  { %1269 = vmatmul.mubr.msk.f32.gmra.mrb[26].mxu1 %vm416_vm0, %v1118_v51 }
  0xf6   :  { %1271 = vmatprep.mubr.msk.f32.mxu1 %vm416_vm0, %v1119_v52 }
  0xf9   :  { %1272 = vmatmul.mubr.msk.f32.gmra.mrb[28].mxu1 %vm416_vm0, %v1120_v55  ;;  %v1725_v55 = vld [vmem:[#allocation4 + $0x68] sm:$0xff] }
  0xfa   :  { %1274 = vmatprep.mubr.msk.f32.mxu1 %vm416_vm0, %v1121_v56 }
  0xfd   :  { %1275 = vmatmul.mubr.msk.f32.gmra.mrb[30].mxu1 %vm416_vm0, %v1122_v57  ;;  %vm900_vm0 = vcmask 261120  }
  0xfe   :  { %vm1776_vm3 = vmpackc.low %vm900_vm0, %vm900_vm0 }
 0x194   :  { %v1229_v59 = vpop.f32.mrb[0].mxu1 }
 0x195   :  { %v531_v60 = vpop.f32.mrb[1].mxu1  ;;  %v757_v20 = vmul.f32 %v1229_v59, %v270_v7  ;;  %v821_v25 = vmul.f32 %v1229_v59, %v286_v8 }
 0x196   :  { %v756_v26 = vmul.f32 %v531_v60, %v269_v10  ;;  %v820_v27 = vmul.f32 %v531_v60, %v285_v11 }
 0x198   :  { %v1232_v61 = vpop.f32.mrb[2].mxu1 }
 0x199   :  { %v541_v62 = vpop.f32.mrb[3].mxu1  ;;  %v1659_v28 = vmul.f32 %v1232_v61, %v1634_v12  ;;  %v1670_v33 = vmul.f32 %v1232_v61, %v1638_v14 }
 0x19a   :  { %v1673_v34 = vmul.f32 %v541_v62, %v1640_v15  ;;  %v1676_v35 = vmul.f32 %v541_v62, %v1642_v16  ;;  %v238_v62 = vld [vmem:[#allocation2 + $0x8] sm:$0xff] }
 0x19c   :  { %v1235_v63 = vpop.f32.mrb[4].mxu1 }
 0x19d   :  { %v551_v0 = vpop.f32.mrb[5].mxu1  ;;  %v1679_v36 = vmul.f32 %v1235_v63, %v1644_v17  ;;  %v1686_v39 = vmul.f32 %v1235_v63, %v1646_v18  ;;  %v254_v63 = vld [vmem:[#allocation3 + $0x8] sm:$0xff] }
 0x19e   :  { %v1689_v40 = vmul.f32 %v551_v0, %v1648_v19  ;;  %v1692_v41 = vmul.f32 %v551_v0, %v1650_v21 }
 0x1a0   :  { %v1238_v1 = vpop.f32.mrb[6].mxu1 }
 0x1a1   :  { %v561_v2 = vpop.f32.mrb[7].mxu1  ;;  %v1695_v42 = vmul.f32 %v1238_v1, %v1652_v22  ;;  %v1702_v45 = vmul.f32 %v1238_v1, %v1654_v23 }
 0x1a2   :  { %v1705_v46 = vmul.f32 %v561_v2, %v1661_v29  ;;  %v1708_v47 = vmul.f32 %v561_v2, %v1663_v30 }
 0x1a4   :  { %v1241_v3 = vpop.f32.mrb[8].mxu1 }
 0x1a5   :  { %v571_v4 = vpop.f32.mrb[9].mxu1  ;;  %v1711_v48 = vmul.f32 %v1241_v3, %v1665_v31  ;;  %v1718_v52 = vmul.f32 %v1241_v3, %v1681_v37 }
 0x1a6   :  { %v1721_v53 = vmul.f32 %v571_v4, %v1683_v38  ;;  %v1728_v60 = vmul.f32 %v571_v4, %v1697_v43 }
 0x1a8   :  { %v1244_v5 = vpop.f32.mrb[10].mxu1 }
 0x1a9   :  { %v1630_v6 = vpop.f32.mrb[11].mxu1  ;;  %v1731_v61 = vmul.f32 %v1244_v5, %v1699_v44  ;;  %v1734_v2 = vmul.f32 %v1244_v5, %v1713_v49 }
 0x1aa   :  { %v1738_v3 = vmul.f32 %v1630_v6, %v1715_v50  ;;  %v1742_v4 = vmul.f32 %v1630_v6, %v1723_v54  ;;  %v256_v50 = vld [vmem:[#allocation3 + $0x18] sm:$0xff] }
 0x1ab   :  { %1908 = vst [vmem:[#allocation22_spill] sm:$0xff] %v1731_v61  ;;  %1909 = vst [vmem:[#allocation23_spill] sm:$0xff] %v1734_v2  ;;  %v1750_v2 = vld [vmem:[#allocation4 + $0x60] sm:$0xff]  ;;  %v240_v61 = vld [vmem:[#allocation2 + $0x18] sm:$0xff] }
 0x1ac   :  { %v1632_v9 = vpop.f32.mrb[12].mxu1  ;;  %1910 = vst [vmem:[#allocation24_spill] sm:$0xff] %v1738_v3  ;;  %1911 = vst [vmem:[#allocation25_spill] sm:$0xff] %v1742_v4 }
 0x1ad   :  { %v1636_v13 = vpop.f32.mrb[13].mxu1 }
 0x1b0   :  { %v1656_v24 = vpop.f32.mrb[14].mxu1 }
 0x1b1   :  { %v1667_v32 = vpop.f32.mrb[15].mxu1 }
 0x1b2   :  { %1905 = vst [vmem:[#allocation19_spill] sm:$0xff] %v1667_v32  ;;  %v1744_v32 = vld [vmem:[#allocation5 + $0x68] sm:$0xff] }
 0x1b4   :  { %v1255_v51 = vpop.f32.mrb[16].mxu1 }
 0x1b5   :  { %v773_v56 = vmul.f32 %v1255_v51, %v286_v8  ;;  %v837_v57 = vmul.f32 %v1255_v51, %v270_v7  ;;  %v677_v59 = vpop.f32.mrb[17].mxu1  ;;  %v237_v51 = vld [vmem:[#allocation2] sm:$0xff] }
 0x1b6   :  { %v772_v0 = vmul.f32 %v677_v59, %v285_v11  ;;  %v836_v1 = vmul.f32 %v677_v59, %v269_v10  ;;  %v1748_v10 = vmul.f32 %v1632_v9, %v1725_v55 }
 0x1b7   :  { %v789_v8 = vadd.f32 %v773_v56, %v757_v20  ;;  %v853_v7 = vsub.f32 %v821_v25, %v837_v57 }
 0x1b8   :  { %1912 = vst [vmem:[#allocation26_spill] sm:$0xff] %v1748_v10  ;;  %v788_v5 = vadd.f32 %v772_v0, %v756_v26  ;;  %v852_v11 = vsub.f32 %v820_v27, %v836_v1  ;;  %v1258_v59 = vpop.f32.mrb[18].mxu1  ;;  %v1758_v26 = vmul.f32 %v1632_v9, %v1744_v32 }
 0x1b9   :  { %v805_v3 = vmul.f32 %v789_v8, %v238_v62  ;;  %v869_v20 = vmul.f32 %v853_v7, %v254_v63  ;;  %v775_v25 = vmul.f32 %v1258_v59, %v1638_v14  ;;  %v839_v56 = vmul.f32 %v1258_v59, %v1634_v12  ;;  %v687_v57 = vpop.f32.mrb[19].mxu1  ;;  %v239_v14 = vld [vmem:[#allocation2 + $0x10] sm:$0xff]  ;;  %v1768_v8 = vld [vmem:[#allocation5 + $0x60] sm:$0xff]  ;;  %v258_v59 = vld [vmem:[#allocation3 + $0x28] sm:$0xff] }
 0x1ba   :  { %v804_v6 = vmul.f32 %v788_v5, %v237_v51  ;;  %v868_v4 = vmul.f32 %v852_v11, %v253_v58  ;;  %v774_v54 = vmul.f32 %v687_v57, %v1642_v16  ;;  %v838_v10 = vmul.f32 %v687_v57, %v1640_v15  ;;  %v255_v63 = vld [vmem:[#allocation3 + $0x10] sm:$0xff]  ;;  %v242_v11 = vld [vmem:[#allocation2 + $0x28] sm:$0xff]  ;;  %v1790_v57 = vld [vmem:[#allocation4 + $0x78] sm:$0xff] }
 0x1bb   :  { %v791_v27 = vadd.f32 %v775_v25, %v1659_v28  ;;  %v855_v62 = vsub.f32 %v1670_v33, %v839_v56  ;;  %v885_v12 = vadd.f32 %v869_v20, %v805_v3  ;;  %v1764_v58 = vmul.f32 %v1636_v13, %v1750_v2 }
 0x1bc   :  { %v790_v0 = vadd.f32 %v774_v54, %v1673_v34  ;;  %v854_v16 = vsub.f32 %v1676_v35, %v838_v10  ;;  %v1261_v15 = vpop.f32.mrb[20].mxu1  ;;  %v884_v1 = vadd.f32 %v868_v4, %v804_v6  ;;  %v241_v54 = vld [vmem:[#allocation2 + $0x20] sm:$0xff] }
 0x1bd   :  { %v807_v9 = vmul.f32 %v791_v27, %v240_v61  ;;  %v871_v7 = vmul.f32 %v855_v62, %v256_v50  ;;  %v777_v28 = vmul.f32 %v1261_v15, %v1646_v18  ;;  %v841_v33 = vmul.f32 %v1261_v15, %v1644_v17  ;;  %v697_v51 = vpop.f32.mrb[21].mxu1  ;;  %v257_v61 = vld [vmem:[#allocation3 + $0x20] sm:$0xff]  ;;  %v243_v15 = vld [vmem:[#allocation2 + $0x30] sm:$0xff] }
 0x1be   :  { %v806_v3 = vmul.f32 %v790_v0, %v239_v14  ;;  %v870_v5 = vmul.f32 %v854_v16, %v255_v63  ;;  %v776_v20 = vmul.f32 %v697_v51, %v1650_v21  ;;  %v840_v34 = vmul.f32 %v697_v51, %v1648_v19  ;;  %v244_v63 = vld [vmem:[#allocation2 + $0x38] sm:$0xff] }
 0x1bf   :  { %v1780_v50 = vadd.f32 %v871_v7, %v807_v9  ;;  %v793_v18 = vadd.f32 %v777_v28, %v1679_v36  ;;  %v857_v17 = vsub.f32 %v1686_v39, %v841_v33  ;;  %v1313_v4 = vpack.c.bf16 %v885_v12, %v884_v1  ;;  %v260_v12 = vld [vmem:[#allocation3 + $0x38] sm:$0xff]  ;;  %v259_v1 = vld [vmem:[#allocation3 + $0x30] sm:$0xff] }
 0x1c0   :  { %v1786_v21 = vmul.f32 %v1636_v13, %v1768_v8  ;;  %v886_v19 = vadd.f32 %v870_v5, %v806_v3  ;;  %v792_v10 = vadd.f32 %v776_v20, %v1689_v40  ;;  %v856_v25 = vsub.f32 %v1692_v41, %v840_v34  ;;  %v1264_v56 = vpop.f32.mrb[22].mxu1  ;;  %v1812_v51 = vld [vmem:[#allocation5 + $0x78] sm:$0xff]  ;;  %v246_v34 = vld [vmem:[#allocation2 + $0x48] sm:$0xff] }
 0x1c1   :  { %v809_v6 = vmul.f32 %v793_v18, %v242_v11  ;;  %v873_v27 = vmul.f32 %v857_v17, %v258_v59  ;;  %v779_v36 = vmul.f32 %v1264_v56, %v1654_v23  ;;  %v843_v39 = vmul.f32 %v1264_v56, %v1652_v22  ;;  %1315 = vmatpush3.bf16.xpose.msk.msra.mxu0 %vm1776_vm3, %v1313_v4  ;;  %v707_v62 = vpop.f32.mrb[23].mxu1  ;;  %v261_v4 = vld [vmem:[#allocation3 + $0x40] sm:$0xff] }
 0x1c2   :  { %v808_v13 = vmul.f32 %v792_v10, %v241_v54  ;;  %v872_v14 = vmul.f32 %v856_v25, %v257_v61  ;;  %v778_v40 = vmul.f32 %v707_v62, %v1663_v30  ;;  %v842_v41 = vmul.f32 %v707_v62, %v1661_v29  ;;  %v245_v61 = vld [vmem:[#allocation2 + $0x40] sm:$0xff]  ;;  %v264_v62 = vld [vmem:[#allocation3 + $0x58] sm:$0xff] }
 0x1c3   :  { %v1915_v0 = vmov 0.0|0.0   ;;  %v1799_v16 = vadd.f32 %v873_v27, %v809_v6  ;;  %v795_v23 = vadd.f32 %v779_v36, %v1695_v42  ;;  %v859_v22 = vsub.f32 %v1702_v45, %v843_v39  ;;  %v283_v27 = vld [vmem:[#allocation4 + $0x70] sm:$0xff]  ;;  %v248_v39 = vld [vmem:[#allocation2 + $0x58] sm:$0xff] }
 0x1c4   :  { %1316 = vmatprep.subr.bf16.mxu0 %v1915_v0  ;;  %v1317_v9 = vpack.c.bf16 %v1780_v50, %v886_v19  ;;  %v1806_v7 = vmul.f32 %v1656_v24, %v1790_v57  ;;  %v1808_v28 = vadd.f32 %v872_v14, %v808_v13  ;;  %v794_v29 = vadd.f32 %v778_v40, %v1705_v46  ;;  %v1267_v33 = vpop.f32.mrb[24].mxu1  ;;  %v262_v50 = vld [vmem:[#allocation3 + $0x48] sm:$0xff]  ;;  %v1916_v13 = vld [vmem:[#allocation21_spill] sm:$0xff] }
 0x1c5   :  { %v858_v30 = vsub.f32 %v1708_v47, %v842_v41  ;;  %v811_v42 = vmul.f32 %v795_v23, %v244_v63  ;;  %v875_v3 = vmul.f32 %v859_v22, %v260_v12  ;;  %v781_v45 = vmul.f32 %v1267_v33, %v1681_v37  ;;  %v717_v11 = vpop.f32.mrb[25].mxu1  ;;  %v1917_v14 = vld [vmem:[#allocation20_spill] sm:$0xff] }
 0x1c6   :  { %v845_v5 = vmul.f32 %v1267_v33, %v1665_v31  ;;  %v810_v59 = vmul.f32 %v794_v29, %v243_v15  ;;  %v780_v18 = vmul.f32 %v717_v11, %v1697_v43  ;;  %v844_v46 = vmul.f32 %v717_v11, %v1683_v38  ;;  %v247_v41 = vld [vmem:[#allocation2 + $0x50] sm:$0xff] }
 0x1c7   :  { %v874_v20 = vmul.f32 %v858_v30, %v259_v1  ;;  %v1818_v17 = vadd.f32 %v875_v3, %v811_v42  ;;  %v797_v47 = vadd.f32 %v781_v45, %v1711_v48  ;;  %v1321_v31 = vpack.c.bf16 %v1799_v16, %v1808_v28  ;;  %v263_v16 = vld [vmem:[#allocation3 + $0x50] sm:$0xff]  ;;  %v1922_v30 = vld [vmem:[#allocation19_spill] sm:$0xff] }
 0x1c8   :  { %v861_v54 = vsub.f32 %v1718_v52, %v845_v5  ;;  %v1826_v37 = vmul.f32 %v1656_v24, %v1812_v51  ;;  %v796_v43 = vadd.f32 %v780_v18, %v1721_v53  ;;  %v860_v38 = vsub.f32 %v1728_v60, %v844_v46  ;;  %v1270_v10 = vpop.f32.mrb[26].mxu1  ;;  %v1920_v15 = vld [vmem:[#allocation24_spill] sm:$0xff] }
 0x1c9   :  { %v1828_v19 = vadd.f32 %v874_v20, %v810_v59  ;;  %v813_v25 = vmul.f32 %v797_v47, %v246_v34  ;;  %v783_v52 = vmul.f32 %v1270_v10, %v1713_v49  ;;  %v847_v56 = vmul.f32 %v1270_v10, %v1699_v44  ;;  %1319 = vmatpush3.bf16.xpose.msk.msra.mxu0 %vm1776_vm3, %v1317_v9  ;;  %v727_v6 = vpop.f32.mrb[27].mxu1  ;;  %v1918_v49 = vld [vmem:[#allocation22_spill] sm:$0xff]  ;;  %v1919_v44 = vld [vmem:[#allocation23_spill] sm:$0xff]  ;;  %v1921_v9 = vld [vmem:[#allocation25_spill] sm:$0xff] }
 0x1ca   :  { %v877_v48 = vmul.f32 %v861_v54, %v262_v50  ;;  %v812_v24 = vmul.f32 %v796_v43, %v245_v61  ;;  %v876_v36 = vmul.f32 %v860_v38, %v261_v4  ;;  %v782_v53 = vmul.f32 %v727_v6, %v1916_v13  ;;  %1320 = vmatprep.subr.bf16.mxu0 %v1915_v0  ;;  %v299_v59 = vld [vmem:[#allocation5 + $0x70] sm:$0xff]  ;;  %v250_v50 = vld [vmem:[#allocation2 + $0x68] sm:$0xff]  ;;  %v1923_v54 = vld [vmem:[#allocation26_spill] sm:$0xff] }
 0x1cb   :  { %v846_v60 = vmul.f32 %v727_v6, %v1917_v14  ;;  %v799_v12 = vadd.f32 %v783_v52, %v1918_v49  ;;  %v863_v40 = vsub.f32 %v1919_v44, %v847_v56  ;;  %v1325_v23 = vpack.c.bf16 %v1818_v17, %v1828_v19  ;;  %v266_v18 = vld [vmem:[#allocation3 + $0x68] sm:$0xff]  ;;  %v249_v19 = vld [vmem:[#allocation2 + $0x60] sm:$0xff]  ;;  %v267_v14 = vld [vmem:[#allocation3 + $0x70] sm:$0xff] }
 0x1cc   :  { %v1839_v63 = vadd.f32 %v877_v48, %v813_v25  ;;  %v892_v22 = vadd.f32 %v876_v36, %v812_v24  ;;  %v798_v1 = vadd.f32 %v782_v53, %v1920_v15  ;;  %v1273_v29 = vpop.f32.mrb[28].mxu1  ;;  %v770_v33 = vmul.f32 %v1922_v30, %v283_v27  ;;  %v265_v43 = vld [vmem:[#allocation3 + $0x60] sm:$0xff]  ;;  %v252_v36 = vld [vmem:[#allocation2 + $0x78] sm:$0xff] }
 0x1cd   :  { %v862_v28 = vsub.f32 %v1921_v9, %v846_v60  ;;  %v815_v42 = vmul.f32 %v799_v12, %v248_v39  ;;  %v879_v3 = vmul.f32 %v863_v40, %v264_v62  ;;  %v785_v45 = vmul.f32 %v1273_v29, %v1744_v32  ;;  %v737_v11 = vpop.f32.mrb[29].mxu1  ;;  %v268_v39 = vld [vmem:[#allocation3 + $0x78] sm:$0xff] }
 0x1ce   :  { %v849_v5 = vmul.f32 %v1273_v29, %v1725_v55  ;;  %v814_v20 = vmul.f32 %v798_v1, %v247_v41  ;;  %v784_v46 = vmul.f32 %v737_v11, %v1768_v8  ;;  %v848_v17 = vmul.f32 %v737_v11, %v1750_v2 }
 0x1cf   :  { %v878_v34 = vmul.f32 %v862_v28, %v263_v16  ;;  %v895_v47 = vadd.f32 %v879_v3, %v815_v42  ;;  %v801_v61 = vadd.f32 %v785_v45, %v1923_v54  ;;  %v1329_v32 = vpack.c.bf16 %v1839_v63, %v892_v22 }
 0x1d0   :  { %v865_v4 = vsub.f32 %v1758_v26, %v849_v5  ;;  %v800_v38 = vadd.f32 %v784_v46, %v1764_v58  ;;  %v864_v10 = vsub.f32 %v1786_v21, %v848_v17  ;;  %v1276_v25 = vpop.f32.mrb[30].mxu1  ;;  %v834_v48 = vmul.f32 %v1922_v30, %v299_v59 }
 0x1d1   :  { %v894_v55 = vadd.f32 %v878_v34, %v814_v20  ;;  %v817_v8 = vmul.f32 %v801_v61, %v250_v50  ;;  %v787_v2 = vmul.f32 %v1276_v25, %v1812_v51  ;;  %v851_v56 = vmul.f32 %v1276_v25, %v1790_v57  ;;  %1323 = vmatpush3.bf16.xpose.msk.msra.mxu0 %vm1776_vm3, %v1321_v31  ;;  %v747_v26 = vpop.f32.mrb[31].mxu1  ;;  %v251_v51 = vld [vmem:[#allocation2 + $0x70] sm:$0xff] }
 0x1d2   :  { %v881_v52 = vmul.f32 %v865_v4, %v266_v18  ;;  %v816_v6 = vmul.f32 %v800_v38, %v249_v19  ;;  %v880_v24 = vmul.f32 %v864_v10, %v265_v43  ;;  %v786_v58 = vmul.f32 %v747_v26, %v299_v59  ;;  %1324 = vmatprep.subr.bf16.mxu0 %v1915_v0 }
 0x1d3   :  { %v850_v62 = vmul.f32 %v747_v26, %v283_v27  ;;  %v803_v13 = vadd.f32 %v787_v2, %v1806_v7  ;;  %v867_v53 = vsub.f32 %v1826_v37, %v851_v56  ;;  %v1333_v57 = vpack.c.bf16 %v895_v47, %v894_v55 }
 0x1d4   :  { %v897_v21 = vadd.f32 %v881_v52, %v817_v8  ;;  %v896_v60 = vadd.f32 %v880_v24, %v816_v6  ;;  %v802_v63 = vadd.f32 %v786_v58, %v770_v33  ;;  %v1448_v37 = vmov 1.0  }
 0x1d5   :  { %v866_v31 = vsub.f32 %v834_v48, %v850_v62  ;;  %v819_v49 = vmul.f32 %v803_v13, %v252_v36  ;;  %v883_v12 = vmul.f32 %v867_v53, %v268_v39 }
 0x1d6   :  { %v818_v44 = vmul.f32 %v802_v63, %v251_v51  ;;  %v1337_v41 = vpack.c.bf16 %v897_v21, %v896_v60 }
 0x1d7   :  { %v882_v40 = vmul.f32 %v866_v31, %v267_v14  ;;  %v899_v16 = vadd.f32 %v883_v12, %v819_v49 }
 0x1d9   :  { %v898_v27 = vadd.f32 %v882_v40, %v818_v44  ;;  %1327 = vmatpush3.bf16.xpose.msk.msra.mxu0 %vm1776_vm3, %v1325_v23 }
 0x1da   :  { %1328 = vmatprep.subr.bf16.mxu0 %v1915_v0 }
 0x1db   :  { %v1341_v7 = vpack.c.bf16 %v899_v16, %v898_v27 }
 0x1e1   :  { %1331 = vmatpush3.bf16.xpose.msk.msra.mxu0 %vm1776_vm3, %v1329_v32 }
 0x1e2   :  { %1332 = vmatprep.subr.bf16.mxu0 %v1915_v0 }
 0x1e9   :  { %1335 = vmatpush3.bf16.xpose.msk.msra.mxu0 %vm1776_vm3, %v1333_v57 }
 0x1ea   :  { %1336 = vmatprep.subr.bf16.mxu0 %v1915_v0 }
 0x1f1   :  { %1339 = vmatpush3.bf16.xpose.msk.msra.mxu0 %vm1776_vm3, %v1337_v41 }
 0x1f2   :  { %1340 = vmatprep.subr.bf16.mxu0 %v1915_v0 }
 0x1f9   :  { %1343 = vmatpush3.bf16.xpose.msk.msra.mxu0 %vm1776_vm3, %v1341_v7 }
 0x200   :  { %1310 = vmatmul.mubr.msk.f32.vlgmr.msra.gmra.mrb[0].mxu0 %vm900_vm0, %v1448_v37 }
 0x2d3   :  { %v1018_v23 = vpop.f32.mrb[0].mxu0 }
 0x2d4   :  { %v1172_v22 = vmul.f32 -1.442695, %v1018_v23  ;;  %v1311_v15 = vpop.f32.mrb[1].mxu0 }
 0x2d6   :  { %1370 = vpow2.f32 %v1172_v22 }
 0x2e0   :  { %v1371_v1 = vpop.eup %1370 }
 0x2e1   :  { %v1025_v9 = vadd.f32 1.0, %v1371_v1 }
 0x2e3   :  { %1372 = vrcp.f32 %v1025_v9 }
 0x2ed   :  { %v1373_v28 = vpop.eup %1372 }
 0x2ee   :  { %1028 = vst [vmem:[#allocation10] sm:$0x1] %v1373_v28 }
 0x2ef   :  { %1409 = shalt.err (!%p1406_p2)
}
 0x2f0   :  { %s1410_s14 = scalar_lea.hbm %s1898_s7, 16 }
 0x2f1   :  { %p1411_p3 = scmp.ne.s32.totalorder %s1898_s7, %s1410_s14  ;;  %p1414_p4 = scmp.lt.u32.totalorder %s1410_s14, %s1898_s7 }
 0x2f3   :  { %p1416_p5 = pnand %p1414_p4, %p1411_p3 }
 0x2f5   :  { %1419 = shalt.err (!%p1416_p5)
}
 0x2f6   :  { %1038 = dma.vmem_to_hbm [thread:$0]  %s1036_s1, 16, %s1898_s7, [#allocation11]  }
 0x2f7   :  { %1432 = dma.done.wait [#allocation11], 16  }
 0x2f8   :  { %1433 = vsyncadd [#allocation11], 4294967280 }
 0x2f9   :  { %1042 = vsyncpa [#allocation11], 1 }
 0x2fa   :  { %1043 = vsyncmov [#allocation6] }
 0x2fd   :  { %s1044_s20 = vpop.sfrf %1043 }
 0x2fe   :  { %p1173_p6 = scmp.ne.s32.totalorder %s1044_s20, 0 }
 0x300   :  { %1048 = shalt.err (%p1173_p6)  }

</bundles_post_ra>
